<compile_context>
chip_gen: v7x
topology: tpu7x:2x2x1
jax: 0.10.0
libtpu: 0.0.40
codegen_flags: <defaults>
</compile_context>

<pallas_src>
import jax
import jax.numpy as jnp
from jax.experimental import pallas as pl
from jax.experimental.pallas import tpu as pltpu


def generator_kernel(z_ref, w1_ref, b1_ref, w2_ref, b2_ref, out_ref):
    # z_ref : (TM, Z)  bf16      w1_ref: (Z, 256)  bf16    b1_ref: (1, 256) f32
    # w2_ref: (256, HWp) bf16    b2_ref: (1, HWp)  f32     out_ref: (TM, HWp) f32
    z = z_ref[...]

    # First linear (bf16 MXU, f32 accumulate) + bias + LeakyReLU(0.01) in f32.
    h = jnp.dot(z, w1_ref[...], preferred_element_type=jnp.float32)
    h = h + b1_ref[...]
    h = jnp.where(h > 0, h, jnp.float32(0.01) * h)

    # Second linear (cast hidden to bf16 for the MXU) + bias + Tanh in f32.
    h = h.astype(w2_ref.dtype)
    o = jnp.dot(h, w2_ref[...], preferred_element_type=jnp.float32)
    o = o + b2_ref[...]
    out_ref[...] = jnp.tanh(o).astype(out_ref.dtype)


def generator_forward(z, w1, b1, w2, b2, *, tm_max=256):
    """z: (B, Z) float32; weights in (in_features, out_features) layout."""
    B, Z = z.shape
    H1 = w1.shape[1]            # hidden width (256)
    HW = w2.shape[1]            # output features (H*W)

    # --- Pad output feature dim to a multiple of 128 (lane-dense stores). ---
    HWp = ((HW + 127) // 128) * 128
    if HWp != HW:
        w2 = jnp.pad(w2, ((0, 0), (0, HWp - HW)))
        b2 = jnp.pad(b2, ((0, 0), (0, HWp - HW)))

    # --- Batch tile: multiple of 8 sublanes, capped at MXU-friendly 256. ---
    tm = min(tm_max, ((B + 7) // 8) * 8)
    Bp = ((B + tm - 1) // tm) * tm
    if Bp != B:
        z = jnp.pad(z, ((0, Bp - B), (0, 0)))

    # --- bf16 operands for the MXU; biases stay f32. ---
    zb = z.astype(jnp.bfloat16)
    w1b = w1.astype(jnp.bfloat16)
    w2b = w2.astype(jnp.bfloat16)
    b1f = b1.astype(jnp.float32)
    b2f = b2.astype(jnp.float32)

    grid = (Bp // tm,)

    cost = pl.CostEstimate(
        flops=2 * Bp * (Z * H1 + H1 * HWp),
        transcendentals=Bp * HWp,                       # tanh on the EUP
        bytes_accessed=(zb.size * 2 + w1b.size * 2 + w2b.size * 2
                        + b1f.size * 4 + b2f.size * 4 + Bp * HWp * 4),
    )

    out = pl.pallas_call(
        generator_kernel,
        out_shape=jax.ShapeDtypeStruct((Bp, HWp), jnp.float32),
        grid_spec=pltpu.PrefetchScalarGridSpec(
            num_scalar_prefetch=0,
            grid=grid,
            in_specs=[
                pl.BlockSpec((tm, Z), lambda i: (i, 0)),      # z: tiled over batch
                pl.BlockSpec((Z, H1), lambda i: (0, 0)),      # w1: resident
                pl.BlockSpec((1, H1), lambda i: (0, 0)),      # b1: resident
                pl.BlockSpec((H1, HWp), lambda i: (0, 0)),    # w2: resident
                pl.BlockSpec((1, HWp), lambda i: (0, 0)),     # b2: resident
            ],
            out_specs=pl.BlockSpec((tm, HWp), lambda i: (i, 0)),
        ),
        compiler_params=pltpu.CompilerParams(
            dimension_semantics=("parallel",)),               # megacore on v7x
        cost_estimate=cost,
    )(zb, w1b, b1f, w2b, b2f)

    return out[:B, :HW]


def generator_reference(z, w1, b1, w2, b2):
    """Pure-JAX reference with the same bf16 MXU casts as the kernel."""
    zb = z.astype(jnp.bfloat16)
    w1b = w1.astype(jnp.bfloat16)
    w2b = w2.astype(jnp.bfloat16)
    h = jnp.dot(zb, w1b, preferred_element_type=jnp.float32) + b1
    h = jnp.where(h > 0, h, jnp.float32(0.01) * h)
    o = jnp.dot(h.astype(jnp.bfloat16), w2b, preferred_element_type=jnp.float32) + b2
    return jnp.tanh(o)


def init_generator_params(key, z_size, img_size):
    """Deterministic init mirroring nn.Linear defaults (U[-1/sqrt(fan_in), +])."""
    hw = img_size[0] * img_size[1]
    k1, k2, k3, k4 = jax.random.split(key, 4)
    bound1 = 1.0 / jnp.sqrt(z_size)
    bound2 = 1.0 / jnp.sqrt(256.0)
    # Stored as (in_features, out_features) = PyTorch weight.T
    w1 = jax.random.uniform(k1, (z_size, 256), jnp.float32, -bound1, bound1)
    b1 = jax.random.uniform(k2, (1, 256), jnp.float32, -bound1, bound1)
    w2 = jax.random.uniform(k3, (256, hw), jnp.float32, -bound2, bound2)
    b2 = jax.random.uniform(k4, (1, hw), jnp.float32, -bound2, bound2)
    return w1, b1, w2, b2


if __name__ == "__main__":
    img_size = (16, 16)   # H, W -> output dim 256 (already a multiple of 128)
    z_size = 32
    batch = 8

    key = jax.random.PRNGKey(0)
    kz, kp = jax.random.split(key)
    z = jax.random.normal(kz, (batch, z_size), jnp.float32)
    w1, b1, w2, b2 = init_generator_params(kp, z_size, img_size)

    out = generator_forward(z, w1, b1, w2, b2)
    out = jax.block_until_ready(out)
    assert out.shape == (batch, img_size[0] * img_size[1])

    # Bit-for-bit-ish check against a reference using the same bf16 casts.
    ref_bf16 = generator_reference(z, w1, b1, w2, b2)
    assert jnp.allclose(out, ref_bf16, atol=1e-3, rtol=1e-3)

    # Loose check against the full-f32 PyTorch-equivalent math (bf16 weights
    # introduce ~0.4% relative error; tanh output is bounded in [-1, 1]).
    h_f32 = z @ w1 + b1
    h_f32 = jnp.where(h_f32 > 0, h_f32, 0.01 * h_f32)
    ref_f32 = jnp.tanh(h_f32 @ w2 + b2)
    assert jnp.allclose(out, ref_f32, atol=5e-2, rtol=5e-2)

    print("KERNEL_OK")
</pallas_src>

<mosaic_0001>
module attributes {stable_mosaic.version = 11 : i64} {
  func.func @generator_kernel(%arg0: i32, %arg1: memref<8x32xbf16, #tpu.memory_space<vmem>>, %arg2: memref<32x256xbf16, #tpu.memory_space<vmem>>, %arg3: memref<1x256xf32, #tpu.memory_space<vmem>>, %arg4: memref<256x256xbf16, #tpu.memory_space<vmem>>, %arg5: memref<1x256xf32, #tpu.memory_space<vmem>>, %arg6: memref<8x256xf32, #tpu.memory_space<vmem>>) attributes {dimension_semantics = [#tpu.dimension_semantics<parallel>], iteration_bounds = array<i64: 1>, scalar_prefetch = 0 : i64, scratch_operands = 0 : i64, tpu.core_type = #tpu.core_type<tc>, window_params = [{transform_indices = @transform_0, window_bounds = array<i64: 8, 32>}, {pipeline_mode = #tpu.pipeline_mode<synchronous>, transform_indices = @transform_1, window_bounds = array<i64: 32, 256>}, {pipeline_mode = #tpu.pipeline_mode<synchronous>, transform_indices = @transform_2, window_bounds = array<i64: 1, 256>}, {pipeline_mode = #tpu.pipeline_mode<synchronous>, transform_indices = @transform_3, window_bounds = array<i64: 256, 256>}, {pipeline_mode = #tpu.pipeline_mode<synchronous>, transform_indices = @transform_4, window_bounds = array<i64: 1, 256>}, {transform_indices = @transform_5, window_bounds = array<i64: 8, 256>}]} {
    %c0 = arith.constant 0 : index
    %c0_0 = arith.constant 0 : index
    %0 = vector.load %arg1[%c0, %c0_0] : memref<8x32xbf16, #tpu.memory_space<vmem>>, vector<8x32xbf16>
    %c0_1 = arith.constant 0 : index
    %c0_2 = arith.constant 0 : index
    %1 = vector.load %arg2[%c0_1, %c0_2] : memref<32x256xbf16, #tpu.memory_space<vmem>>, vector<32x256xbf16>
    %cst = arith.constant dense<0.000000e+00> : vector<8x256xf32>
    %2 = tpu.matmul %0, %1, %cst {dimension_numbers = #tpu.dot_dimension_numbers<[1], [0], [0], [1], [0, 0, 1, 1], [], []>} : vector<8x32xbf16>, vector<32x256xbf16>, vector<8x256xf32> -> vector<8x256xf32>
    %c0_3 = arith.constant 0 : index
    %c0_4 = arith.constant 0 : index
    %3 = vector.load %arg3[%c0_3, %c0_4] : memref<1x256xf32, #tpu.memory_space<vmem>>, vector<1x256xf32>
    %4 = vector.broadcast %3 : vector<1x256xf32> to vector<8x256xf32>
    %5 = arith.addf %2, %4 : vector<8x256xf32>
    %cst_5 = arith.constant 0.000000e+00 : f32
    %6 = vector.broadcast %cst_5 : f32 to vector<8x256xf32>
    %7 = arith.cmpf ogt, %5, %6 : vector<8x256xf32>
    %cst_6 = arith.constant 0.00999999977 : f32
    %8 = vector.broadcast %cst_6 : f32 to vector<8x256xf32>
    %9 = arith.mulf %8, %5 : vector<8x256xf32>
    %10 = arith.select %7, %5, %9 : vector<8x256xi1>, vector<8x256xf32>
    %11 = arith.truncf %10 : vector<8x256xf32> to vector<8x256xbf16>
    %c0_7 = arith.constant 0 : index
    %c0_8 = arith.constant 0 : index
    %12 = vector.load %arg4[%c0_7, %c0_8] : memref<256x256xbf16, #tpu.memory_space<vmem>>, vector<256x256xbf16>
    %cst_9 = arith.constant dense<0.000000e+00> : vector<8x256xf32>
    %13 = tpu.matmul %11, %12, %cst_9 {dimension_numbers = #tpu.dot_dimension_numbers<[1], [0], [0], [1], [0, 0, 1, 1], [], []>} : vector<8x256xbf16>, vector<256x256xbf16>, vector<8x256xf32> -> vector<8x256xf32>
    %c0_10 = arith.constant 0 : index
    %c0_11 = arith.constant 0 : index
    %14 = vector.load %arg5[%c0_10, %c0_11] : memref<1x256xf32, #tpu.memory_space<vmem>>, vector<1x256xf32>
    %15 = vector.broadcast %14 : vector<1x256xf32> to vector<8x256xf32>
    %16 = arith.addf %13, %15 : vector<8x256xf32>
    %17 = math.tanh %16 : vector<8x256xf32>
    %c0_12 = arith.constant 0 : index
    %c0_13 = arith.constant 0 : index
    %18 = vector.load %arg6[%c0_12, %c0_13] : memref<8x256xf32, #tpu.memory_space<vmem>>, vector<8x256xf32>
    tpu.vector_store %arg6[%c0_12, %c0_13], %17 {strides = array<i32>} : memref<8x256xf32, #tpu.memory_space<vmem>>, vector<8x256xf32>,
    return
  }
  func.func @transform_0(%arg0: i32) -> (i32, i32) {
    %c0_i32 = arith.constant 0 : i32
    %c0_i32_0 = arith.constant 0 : i32
    return %arg0, %c0_i32 : i32, i32
  }
  func.func @transform_1(%arg0: i32) -> (i32, i32) {
    %c0_i32 = arith.constant 0 : i32
    %c0_i32_0 = arith.constant 0 : i32
    %c0_i32_1 = arith.constant 0 : i32
    return %c0_i32, %c0_i32_0 : i32, i32
  }
  func.func @transform_2(%arg0: i32) -> (i32, i32) {
    %c0_i32 = arith.constant 0 : i32
    %c0_i32_0 = arith.constant 0 : i32
    %c0_i32_1 = arith.constant 0 : i32
    return %c0_i32, %c0_i32_0 : i32, i32
  }
  func.func @transform_3(%arg0: i32) -> (i32, i32) {
    %c0_i32 = arith.constant 0 : i32
    %c0_i32_0 = arith.constant 0 : i32
    %c0_i32_1 = arith.constant 0 : i32
    return %c0_i32, %c0_i32_0 : i32, i32
  }
  func.func @transform_4(%arg0: i32) -> (i32, i32) {
    %c0_i32 = arith.constant 0 : i32
    %c0_i32_0 = arith.constant 0 : i32
    %c0_i32_1 = arith.constant 0 : i32
    return %c0_i32, %c0_i32_0 : i32, i32
  }
  func.func @transform_5(%arg0: i32) -> (i32, i32) {
    %c0_i32 = arith.constant 0 : i32
    %c0_i32_0 = arith.constant 0 : i32
    return %arg0, %c0_i32 : i32, i32
  }
}

</mosaic_0001>

<bundles_post_ra>
// kernel: tpu_custom_call.1
= control target key start
LH: loop header
LB: loop body
LE: loop exit
PB: predicated region body
PF: predicated region fallthrough
CT: control target
= control target key end

     0   :  { %10 = vsyncpa [#allocation3], 0  ;;  %s709_s0 = inlined_call_operand.hbm [shape: bf16[8,32], index: 0, kind: input, shape index: {}]   ;;  %s710_s1 = inlined_call_operand.hbm [shape: bf16[32,256], index: 1, kind: input, shape index: {}]   ;;  %s711_s2 = inlined_call_operand.vmem [shape: f32[1,256], index: 2, kind: input, shape index: {}]   ;;  %s712_s3 = inlined_call_operand.hbm [shape: bf16[256,256], index: 3, kind: input, shape index: {}]   ;;  %s713_s4 = inlined_call_operand.vmem [shape: f32[1,256], index: 4, kind: input, shape index: {}]   ;;  %s714_s5 = inlined_call_operand.hbm [shape: f32[8,256], index: 5, kind: output, shape index: {}]  }
   0x1   :  { %11 = vsyncpa [#allocation6], 0 }
   0x2   :  { %12 = vsyncpa [#allocation4], 0  ;;  %s612_s18 = smov [#allocation5]   ;;  %s518_s22 = scalar_lea.hbm %s710_s1, 512 }
   0x3   :  { %s28_s19 = sshll.u32 %s612_s18, 4  ;;  %p519_p0 = scmp.ne.s32.totalorder %s710_s1, %s518_s22  ;;  %s29_s19 = int_to_ptr.vmem [resolvable:$true] %s28_s19 }
   0x4   :  { %p522_p1 = scmp.lt.u32.totalorder %s518_s22, %s710_s1 }
   0x6   :  { %p524_p2 = pnand %p522_p1, %p519_p0 }
   0x8   :  { %527 = shalt.err (!%p524_p2)
}
   0x9   :  { %s528_s27 = scalar_lea.vmem %s29_s19, 512  ;;  %p533_p4 = scmp.lt.s32.totalorder %s29_s19, %s29_s19 }
   0xa   :  { %p529_p3 = scmp.ne.s32.totalorder %s29_s19, %s528_s27  ;;  %p534_p5 = scmp.lt.s32.totalorder %s528_s27, %s528_s27 }
   0xc   :  { %p535_p6 = por %p534_p5, %p533_p4 }
   0xe   :  { %p536_p7 = pnand %p535_p6, %p529_p3 }
  0x10   :  { %539 = shalt.err (!%p536_p7)
}
  0x11   :  { %s613_s28 = smov 128   ;;  %s614_s29 = smov 8  }
  0x12   :  { %34 = dma.hbm_to_vmem [thread:$0]  %s710_s1, 512, %s29_s19, [#allocation6], %s613_s28, %s613_s28, %s614_s29  }
  0x13   :  { %s615_s7 = smov [#allocation2]   ;;  %s616_s9 = smov [#allocation7]  }
  0x14   :  { %s19_s8 = sshll.u32 %s615_s7, 4  ;;  %s42_s10 = sshll.u32 %s616_s9, 4  ;;  %s20_s8 = int_to_ptr.vmem [resolvable:$true] %s19_s8  ;;  %s43_s10 = int_to_ptr.vmem [resolvable:$true] %s42_s10 }
  0x15   :  { %s540_s13 = scalar_lea.hbm %s709_s0, 64 }
  0x16   :  { %p541_p8 = scmp.ne.s32.totalorder %s709_s0, %s540_s13  ;;  %p544_p9 = scmp.lt.u32.totalorder %s540_s13, %s709_s0 }
  0x18   :  { %p546_p10 = pnand %p544_p9, %p541_p8 }
  0x1a   :  { %549 = shalt.err (!%p546_p10)
}
  0x1b   :  { %s550_s1 = scalar_lea.vmem %s20_s8, 64  ;;  %p555_p12 = scmp.lt.s32.totalorder %s20_s8, %s20_s8 }
  0x1c   :  { %p551_p11 = scmp.ne.s32.totalorder %s20_s8, %s550_s1  ;;  %p556_p13 = scmp.lt.s32.totalorder %s550_s1, %s550_s1 }
  0x1e   :  { %p557_p0 = por %p556_p13, %p555_p12 }
  0x20   :  { %p558_p1 = pnand %p557_p0, %p551_p11 }
  0x22   :  { %561 = shalt.err (!%p558_p1)
}
  0x23   :  { %22 = dma.hbm_to_vmem [thread:$0]  %s709_s0, 64, %s20_s8, [#allocation3]  }
  0x24   :  { %s562_s22 = scalar_lea.hbm %s712_s3, 4096 }
  0x25   :  { %p563_p2 = scmp.ne.s32.totalorder %s712_s3, %s562_s22  ;;  %p566_p3 = scmp.lt.u32.totalorder %s562_s22, %s712_s3 }
  0x27   :  { %p568_p4 = pnand %p566_p3, %p563_p2 }
  0x29   :  { %571 = shalt.err (!%p568_p4)
}
  0x2a   :  { %s572_s27 = scalar_lea.vmem %s43_s10, 4096  ;;  %p577_p6 = scmp.lt.s32.totalorder %s43_s10, %s43_s10 }
  0x2b   :  { %p573_p5 = scmp.ne.s32.totalorder %s43_s10, %s572_s27  ;;  %p578_p7 = scmp.lt.s32.totalorder %s572_s27, %s572_s27 }
  0x2d   :  { %p579_p8 = por %p578_p7, %p577_p6 }
  0x2f   :  { %p580_p9 = pnand %p579_p8, %p573_p5 }
  0x31   :  { %583 = shalt.err (!%p580_p9)
}
  0x32   :  { %48 = dma.hbm_to_vmem [thread:$0]  %s712_s3, 4096, %s43_s10, [#allocation6], %s613_s28, %s613_s28, %s614_s29  }
  0x33   :  { %606 = dma.done.wait [#allocation3], 64  }
  0x34   :  { %607 = vsyncadd [#allocation3], 4294967232 }
  0x35   :  { %608 = dma.done.wait [#allocation6], 4608  }
  0x36   :  { %609 = vsyncadd [#allocation6], 4294962688  ;;  %v617_v0 = vmov 0   ;;  %v460_v1 = vld [vmem:[#allocation5 + $0x4] ss:$8 sps:$4 sm:$0xff]   ;;  %vm98_vm0 = vcmask 261120   ;;  %v68_v38 = vlaneseq }
  0x37   :  { %134 = vmatprep.mubr.bf16.mxu0 %v617_v0  ;;  %v462_v2 = vld [vmem:[#allocation5] ss:$8 sps:$4 sm:$0xff]   ;;  %102 = vmatprep.subr.bf16.mxu0 %v460_v1  ;;  %v463_v3 = vld [vmem:[#allocation5 + $0x14] ss:$8 sps:$4 sm:$0xff]   ;;  %v465_v4 = vld [vmem:[#allocation5 + $0x10] ss:$8 sps:$4 sm:$0xff]  }
  0x38   :  { %103 = vmatpush1.bf16.msra.mxu0 %v462_v2  ;;  %v466_v5 = vld [vmem:[#allocation7 + $0x4] ss:$8 sps:$4 sm:$0xff]   ;;  %v468_v6 = vld [vmem:[#allocation7] ss:$8 sps:$4 sm:$0xff]   ;;  %v469_v7 = vld [vmem:[#allocation7 + $0x14] ss:$8 sps:$4 sm:$0xff]  }
  0x39   :  { %104 = vmatprep.subr.bf16.mxu0 %v463_v3  ;;  %355 = vmatprep.subr.bf16.mxu1 %v466_v5  ;;  %v61_v8 = vld [vmem:[#allocation2] sm:$0xf]  ;;  %v471_v9 = vld [vmem:[#allocation7 + $0x10] ss:$8 sps:$4 sm:$0xff]   ;;  %v472_v10 = vld [vmem:[#allocation7 + $0x24] ss:$8 sps:$4 sm:$0xff]  }
  0x3a   :  { %356 = vmatpush1.bf16.msra.mxu1 %v468_v6  ;;  %v474_v11 = vld [vmem:[#allocation7 + $0x20] ss:$8 sps:$4 sm:$0xff]   ;;  %v475_v12 = vld [vmem:[#allocation7 + $0x34] ss:$8 sps:$4 sm:$0xff]   ;;  %v477_v13 = vld [vmem:[#allocation7 + $0x30] ss:$8 sps:$4 sm:$0xff]  }
  0x3b   :  { %357 = vmatprep.subr.bf16.mxu1 %v469_v7  ;;  %v478_v14 = vld [vmem:[#allocation7 + $0x44] ss:$8 sps:$4 sm:$0xff]   ;;  %v480_v15 = vld [vmem:[#allocation7 + $0x40] ss:$8 sps:$4 sm:$0xff]   ;;  %v481_v16 = vld [vmem:[#allocation7 + $0x54] ss:$8 sps:$4 sm:$0xff]  }
  0x3c   :  { %105 = vmatpush1.bf16.msra.mxu0 %v465_v4  ;;  %v483_v17 = vld [vmem:[#allocation7 + $0x50] ss:$8 sps:$4 sm:$0xff]   ;;  %v484_v18 = vld [vmem:[#allocation7 + $0x64] ss:$8 sps:$4 sm:$0xff]   ;;  %v486_v19 = vld [vmem:[#allocation7 + $0x60] ss:$8 sps:$4 sm:$0xff]  }
  0x3d   :  { %v487_v20 = vld [vmem:[#allocation7 + $0x74] ss:$8 sps:$4 sm:$0xff]   ;;  %v489_v21 = vld [vmem:[#allocation7 + $0x70] ss:$8 sps:$4 sm:$0xff]   ;;  %v490_v22 = vld [vmem:[#allocation7 + $0x84] ss:$8 sps:$4 sm:$0xff]  }
  0x3e   :  { %358 = vmatpush1.bf16.msra.mxu1 %v471_v9  ;;  %v492_v23 = vld [vmem:[#allocation7 + $0x80] ss:$8 sps:$4 sm:$0xff]   ;;  %v493_v24 = vld [vmem:[#allocation7 + $0x94] ss:$8 sps:$4 sm:$0xff]   ;;  %v495_v25 = vld [vmem:[#allocation7 + $0x90] ss:$8 sps:$4 sm:$0xff]  }
  0x3f   :  { %420 = vmatmul.mubr.msk.bf16.vlgmr.msra.gmra.mrb[0].mxu0 %vm98_vm0, %v61_v8  ;;  %359 = vmatprep.subr.bf16.mxu1 %v472_v10  ;;  %v496_v26 = vld [vmem:[#allocation7 + $0xa4] ss:$8 sps:$4 sm:$0xff]   ;;  %v498_v27 = vld [vmem:[#allocation7 + $0xa0] ss:$8 sps:$4 sm:$0xff]   ;;  %v499_v28 = vld [vmem:[#allocation7 + $0xb4] ss:$8 sps:$4 sm:$0xff]  }
  0x40   :  { %v501_v29 = vld [vmem:[#allocation7 + $0xb0] ss:$8 sps:$4 sm:$0xff]   ;;  %v502_v30 = vld [vmem:[#allocation7 + $0xc4] ss:$8 sps:$4 sm:$0xff]   ;;  %v504_v31 = vld [vmem:[#allocation7 + $0xc0] ss:$8 sps:$4 sm:$0xff]  }
  0x41   :  { %v505_v32 = vld [vmem:[#allocation7 + $0xd4] ss:$8 sps:$4 sm:$0xff]   ;;  %v507_v33 = vld [vmem:[#allocation7 + $0xd0] ss:$8 sps:$4 sm:$0xff]   ;;  %v508_v34 = vld [vmem:[#allocation7 + $0xe4] ss:$8 sps:$4 sm:$0xff]  }
  0x42   :  { %360 = vmatpush1.bf16.msra.mxu1 %v474_v11  ;;  %v510_v35 = vld [vmem:[#allocation7 + $0xe0] ss:$8 sps:$4 sm:$0xff]   ;;  %v511_v36 = vld [vmem:[#allocation7 + $0xf4] ss:$8 sps:$4 sm:$0xff]   ;;  %v513_v37 = vld [vmem:[#allocation7 + $0xf0] ss:$8 sps:$4 sm:$0xff]  }
  0x43   :  { %361 = vmatprep.subr.bf16.mxu1 %v475_v12  ;;  %v69_v39 = vshrl.u32 %v68_v38, 7  ;;  %v66_v41 = vld [vmem:[%s711_s2] sm:$0x3]  ;;  %s618_s6 = smov [#allocation8]  }
  0x44   :  { %v183_v57 = vld [vmem:[%s713_s4] sm:$0x3]  ;;  %s406_s7 = sshll.u32 %s618_s6, 4  ;;  %s407_s7 = int_to_ptr.vmem [resolvable:$true] %s406_s7 }
  0x45   :  { %v70_v40 = vsub.s32 0, %v69_v39  ;;  %v74_v42 = vsub.s32 1, %v69_v39  ;;  %s584_s8 = scalar_lea.vmem %s407_s7, 256  ;;  %p589_p11 = scmp.lt.s32.totalorder %s407_s7, %s407_s7 }
  0x46   :  { %362 = vmatpush1.bf16.msra.mxu1 %v477_v13  ;;  %p585_p10 = scmp.ne.s32.totalorder %s407_s7, %s584_s8  ;;  %p590_p12 = scmp.lt.s32.totalorder %s584_s8, %s584_s8 }
  0x47   :  { %363 = vmatprep.subr.bf16.mxu1 %v478_v14  ;;  %v71_v43 = vrot.slane %v66_v41, %v70_v40  ;;  %v75_v44 = vrot.slane %v66_v41, %v74_v42  ;;  %v188_v58 = vrot.slane %v183_v57, %v70_v40  ;;  %v192_v59 = vrot.slane %v183_v57, %v74_v42 }
  0x48   :  { %p591_p13 = por %p590_p12, %p589_p11 }
  0x4a   :  { %364 = vmatpush1.bf16.msra.mxu1 %v480_v15  ;;  %p592_p0 = pnand %p591_p13, %p585_p10 }
  0x4b   :  { %365 = vmatprep.subr.bf16.mxu1 %v481_v16 }
  0x4e   :  { %366 = vmatpush1.bf16.msra.mxu1 %v483_v17 }
  0x4f   :  { %367 = vmatprep.subr.bf16.mxu1 %v484_v18 }
  0x52   :  { %368 = vmatpush1.bf16.msra.mxu1 %v486_v19 }
  0x53   :  { %369 = vmatprep.subr.bf16.mxu1 %v487_v20 }
  0x56   :  { %370 = vmatpush1.bf16.msra.mxu1 %v489_v21 }
  0x57   :  { %371 = vmatprep.subr.bf16.mxu1 %v490_v22 }
  0x5a   :  { %372 = vmatpush1.bf16.msra.mxu1 %v492_v23 }
  0x5b   :  { %373 = vmatprep.subr.bf16.mxu1 %v493_v24 }
  0x5e   :  { %374 = vmatpush1.bf16.msra.mxu1 %v495_v25 }
  0x5f   :  { %375 = vmatprep.subr.bf16.mxu1 %v496_v26 }
  0x62   :  { %376 = vmatpush1.bf16.msra.mxu1 %v498_v27 }
  0x63   :  { %377 = vmatprep.subr.bf16.mxu1 %v499_v28 }
  0x66   :  { %378 = vmatpush1.bf16.msra.mxu1 %v501_v29 }
  0x67   :  { %379 = vmatprep.subr.bf16.mxu1 %v502_v30 }
  0x6a   :  { %380 = vmatpush1.bf16.msra.mxu1 %v504_v31 }
  0x6b   :  { %381 = vmatprep.subr.bf16.mxu1 %v505_v32 }
  0x6e   :  { %382 = vmatpush1.bf16.msra.mxu1 %v507_v33 }
  0x6f   :  { %383 = vmatprep.subr.bf16.mxu1 %v508_v34 }
  0x72   :  { %384 = vmatpush1.bf16.msra.mxu1 %v510_v35 }
  0x73   :  { %385 = vmatprep.subr.bf16.mxu1 %v511_v36 }
  0x76   :  { %386 = vmatpush1.bf16.msra.mxu1 %v513_v37 }
 0x112   :  { %v136_v45 = vpop.f32.mrb[0].mxu0 }
 0x113   :  { %v137_v46 = vadd.f32 %v136_v45, %v71_v43  ;;  %v138_v47 = vpop.f32.mrb[1].mxu0 }
 0x114   :  { %v139_v48 = vadd.f32 %v138_v47, %v75_v44  ;;  %v140_v49 = vpop.f32.mrb[2].mxu0 }
 0x115   :  { %vm143_vm1 = vcmp.gt.f32.partialorder %v137_v46, 0.0  ;;  %v145_v50 = vmul.f32 0.01, %v137_v46  ;;  %v141_v51 = vpop.f32.mrb[3].mxu0 }
 0x116   :  { %vm144_vm2 = vcmp.gt.f32.partialorder %v139_v48, 0.0  ;;  %v146_v52 = vmul.f32 0.01, %v139_v48 }
 0x117   :  { %v147_v53 = vsel %vm143_vm1, %v137_v46, %v145_v50 }
 0x118   :  { %v148_v54 = vsel %vm144_vm2, %v139_v48, %v146_v52  ;;  %v149_v56 = vpack.c.bf16 %v147_v53, %v147_v53 }
 0x119   :  { %v150_v55 = vpack.c.bf16 %v148_v54, %v148_v54 }
 0x11b   :  { %387 = vmatprep.mubr.bf16.mxu1 %v150_v55 }
 0x11c   :  { %388 = vmatmul.mubr.bf16.vlgmr.msra.gmra.mrb[0].mxu1 %v149_v56 }
 0x1ef   :  { %v389_v60 = vpop.f32.mrb[0].mxu1 }
 0x1f0   :  { %v390_v61 = vadd.f32 %v389_v60, %v188_v58  ;;  %v391_v62 = vpop.f32.mrb[1].mxu1 }
 0x1f1   :  { %v392_v63 = vadd.f32 %v391_v62, %v192_v59  ;;  %v393_v0 = vpop.f32.mrb[2].mxu1 }
 0x1f2   :  { %514 = vtanh.f32 %v390_v61  ;;  %v394_v1 = vpop.f32.mrb[3].mxu1 }
 0x1f3   :  { %516 = vtanh.f32 %v392_v63 }
 0x1fc   :  { %v515_v2 = vpop.eup %514 }
 0x1fd   :  { %v517_v3 = vpop.eup %516  ;;  %398 = vst [vmem:[#allocation8] sm:$0xff] %v515_v2 }
 0x1fe   :  { %399 = vst [vmem:[#allocation8 + $0x8] sm:$0xff] %v517_v3 }
 0x1ff   :  { %595 = shalt.err (!%p592_p0)
}
 0x200   :  { %s596_s10 = scalar_lea.hbm %s714_s5, 256 }
 0x201   :  { %p597_p1 = scmp.ne.s32.totalorder %s714_s5, %s596_s10  ;;  %p600_p2 = scmp.lt.u32.totalorder %s596_s10, %s714_s5 }
 0x203   :  { %p602_p3 = pnand %p600_p2, %p597_p1 }
 0x205   :  { %605 = shalt.err (!%p602_p3)
}
 0x206   :  { %409 = dma.vmem_to_hbm [thread:$0]  %s407_s7, 256, %s714_s5, [#allocation4]  }
 0x207   :  { %610 = dma.done.wait [#allocation4], 256  }
 0x208   :  { %611 = vsyncadd [#allocation4], 4294967040 }
 0x209   :  { %413 = vsyncpa [#allocation3], 1 }
 0x20a   :  { %414 = vsyncpa [#allocation6], 1 }
 0x20b   :  { %415 = vsyncpa [#allocation4], 1 }

</bundles_post_ra>
